<compile_context>
chip_gen: v7x
topology: tpu7x:2x2x1
jax: 0.10.0
libtpu: 0.0.40
codegen_flags: <defaults>
</compile_context>

<pallas_src>
import jax
import jax.numpy as jnp
from jax.experimental import pallas as pl
from jax.experimental.pallas import tpu as pltpu

EMBEDDING_SIZE = 2
IN_DIM = 64          # 1 * 8 * 8 flattened image
H1, H2 = 32, 16

# Original six nn.Linear layers, stored (in, out) so y = x @ W + b.
LAYER_DIMS = [
    (IN_DIM, H1),            # encoder L1
    (H1, H2),                # encoder L2
    (H2, EMBEDDING_SIZE),    # encoder L3 (linear embedding)
    (EMBEDDING_SIZE, H2),    # decoder L1
    (H2, H1),                # decoder L2
    (H1, IN_DIM),            # decoder L3 (reconstruction)
]

# After folding encoder-L3 with decoder-L1 (no activation between them):
FOLDED_DIMS = [(IN_DIM, H1), (H1, H2), (H2, H2), (H2, H1), (H1, IN_DIM)]
NL = len(FOLDED_DIMS)   # 5 fused layers
PAD = 64                # every folded layer fits a zero-padded 64x64 slot
_TB_MAX = 2048          # max batch rows per grid step


def _round_up(n, m):
    return ((n + m - 1) // m) * m


def _pick_batch_tile(batch):
    """Batch-tile (sublane) size.

    - tiny batches: a single minimal tile (multiple of 16 rows for bf16 packing)
    - otherwise: >=2 tiles so both v7x TensorCores participate, each <= _TB_MAX,
      sized to minimize batch padding while amortizing per-step overhead.
    """
    if batch <= 512:
        return max(16, _round_up(batch, 16))
    n_tiles = max(2, -(-batch // _TB_MAX))
    return _round_up(-(-batch // n_tiles), 16)


def _ae_kernel(w_ref, b_ref, x_ref, o_ref):
    """Fused 5-layer MLP on one row-major batch tile.

    w_ref: (NL, 64, 64) bf16, zero-padded W (in, out) per layer (VMEM-resident)
    b_ref: (NL, 1, 64)  f32,  zero-padded bias row per layer (VMEM-resident)
    x_ref: (TB, 64)     bf16, batch tile (batch on sublanes, features on lanes)
    o_ref: (TB, 64)     bf16, reconstruction tile
    Zero padding keeps unused feature columns exactly 0 through every ReLU
    layer, so one uniform TBx64x64 matmul per layer is exact.
    """
    h = x_ref[...]                                        # (TB, 64) bf16
    for li in range(NL):                                  # unrolled at trace time
        y = jnp.dot(h.astype(jnp.bfloat16), w_ref[li],
                    preferred_element_type=jnp.float32)   # bf16 MXU, f32 acc
        y = y + b_ref[li]                                 # (1,64) f32 bias broadcast
        h = jnp.maximum(y, 0.0) if li < NL - 1 else y     # ReLU on hidden layers (f32)
    o_ref[...] = jax.nn.sigmoid(h).astype(o_ref.dtype)    # final sigmoid (f32 EUP)


def init_params(key):
    """Deterministic parameter init (PyTorch-Linear-like uniform fan-in scaling)."""
    params = []
    for (din, dout) in LAYER_DIMS:
        key, kw, kb = jax.random.split(key, 3)
        bound = 1.0 / jnp.sqrt(jnp.float32(din))
        w = jax.random.uniform(kw, (din, dout), jnp.float32, -bound, bound)
        b = jax.random.uniform(kb, (dout,), jnp.float32, -bound, bound)
        params.append((w, b))
    return params


def prepare_params(params):
    """One-time prep: fold the linear embedding pair and pack padded slabs."""
    (w1, b1), (w2, b2), (w3, b3), (w4, b4), (w5, b5), (w6, b6) = params
    # encoder L3 is linear -> fold with decoder L1:  x@W3@W4 + (b3@W4 + b4)
    w34 = w3 @ w4                       # (16, 16)
    b34 = b3 @ w4 + b4                  # (16,)
    folded = [(w1, b1), (w2, b2), (w34, b34), (w5, b5), (w6, b6)]

    w_slab = jnp.zeros((NL, PAD, PAD), jnp.bfloat16)   # W stored (in, out), zero-padded
    b_slab = jnp.zeros((NL, 1, PAD), jnp.float32)      # bias row vectors, zero-padded
    for li, (w, b) in enumerate(folded):
        din, dout = w.shape
        w_slab = w_slab.at[li, :din, :dout].set(w.astype(jnp.bfloat16))
        b_slab = b_slab.at[li, 0, :dout].set(b.astype(jnp.float32))
    return w_slab, b_slab


def autoencoder_forward(x_nchw, w_slab, b_slab):
    B = x_nchw.shape[0]
    x2d = x_nchw.reshape(B, -1).astype(jnp.bfloat16)     # (B, 64): free flatten, bf16 stream
    assert x2d.shape[1] == IN_DIM

    tb = _pick_batch_tile(B)
    b_pad = _round_up(B, tb)
    if b_pad != B:
        # Only the ragged tail tile is padded (zeros -> finite garbage rows, sliced off below).
        x2d = jnp.pad(x2d, ((0, b_pad - B), (0, 0)))

    grid = (b_pad // tb,)
    cost = pl.CostEstimate(
        flops=2 * b_pad * NL * PAD * PAD,
        transcendentals=b_pad * IN_DIM,
        bytes_accessed=2 * b_pad * IN_DIM * 2 + NL * PAD * PAD * 2 + NL * PAD * 4,
    )
    out = pl.pallas_call(
        _ae_kernel,
        out_shape=jax.ShapeDtypeStruct((b_pad, IN_DIM), jnp.bfloat16),
        grid=grid,
        in_specs=[
            pl.BlockSpec((NL, PAD, PAD), lambda i: (0, 0, 0)),   # weight slab, VMEM-resident
            pl.BlockSpec((NL, 1, PAD), lambda i: (0, 0, 0)),     # bias slab, VMEM-resident
            pl.BlockSpec((tb, IN_DIM), lambda i: (i, 0)),        # batch tile, row-major
        ],
        out_specs=pl.BlockSpec((tb, IN_DIM), lambda i: (i, 0)),
        compiler_params=pltpu.CompilerParams(
            dimension_semantics=("parallel",)),                  # split batch tiles across TCs
        cost_estimate=cost,
    )(w_slab, b_slab, x2d)

    out = out[:B].astype(jnp.float32)                            # drop batch padding, f32 out
    return out.reshape(x_nchw.shape)                             # original NCHW layout


def _reference_forward(x_nchw, params):
    """Pure-JAX f32 reference matching the original 6-layer module semantics."""
    B = x_nchw.shape[0]
    h = x_nchw.reshape(B, -1).astype(jnp.float32)
    for li, (w, b) in enumerate(params):
        h = h @ w + b
        if li in (0, 1, 3, 4):          # ReLU on hidden layers; embedding (li==2) linear
            h = jnp.maximum(h, 0.0)
    h = jax.nn.sigmoid(h)               # final reconstruction
    return h.reshape(x_nchw.shape)


if __name__ == "__main__":
    key = jax.random.PRNGKey(0)
    kx, kp = jax.random.split(key)

    # small NCHW input: batch=2, channels=1, spatial=8x8 -> flattened dim 64
    x = jax.random.normal(kx, (2, 1, 8, 8), jnp.float32)
    params = init_params(kp)
    w_slab, b_slab = prepare_params(params)

    y = autoencoder_forward(x, w_slab, b_slab)
    y = jax.block_until_ready(y)

    y_ref = _reference_forward(x, params)
    assert y.shape == x.shape
    # bf16 weights + bf16 streaming I/O + folded embedding pair -> loose tol vs f32 ref
    max_diff = jnp.max(jnp.abs(y - y_ref))
    assert jnp.allclose(y, y_ref, atol=3e-2, rtol=3e-2), f"mismatch vs reference: {max_diff:.4e}"

    print("KERNEL_OK")
</pallas_src>

<mosaic_0001>
module attributes {stable_mosaic.version = 11 : i64} {
  func.func @_ae_kernel(%arg0: i32, %arg1: memref<5x64x64xbf16, #tpu.memory_space<vmem>>, %arg2: memref<5x1x64xf32, #tpu.memory_space<vmem>>, %arg3: memref<16x64xbf16, #tpu.memory_space<vmem>>, %arg4: memref<16x64xbf16, #tpu.memory_space<vmem>>) attributes {dimension_semantics = [#tpu.dimension_semantics<parallel>], iteration_bounds = array<i64: 1>, scalar_prefetch = 0 : i64, scratch_operands = 0 : i64, tpu.core_type = #tpu.core_type<tc>, window_params = [{pipeline_mode = #tpu.pipeline_mode<synchronous>, transform_indices = @transform_0, window_bounds = array<i64: 5, 64, 64>}, {pipeline_mode = #tpu.pipeline_mode<synchronous>, transform_indices = @transform_1, window_bounds = array<i64: 5, 1, 64>}, {transform_indices = @transform_2, window_bounds = array<i64: 16, 64>}, {transform_indices = @transform_3, window_bounds = array<i64: 16, 64>}]} {
    %c0 = arith.constant 0 : index
    %c0_0 = arith.constant 0 : index
    %0 = vector.load %arg3[%c0, %c0_0] : memref<16x64xbf16, #tpu.memory_space<vmem>>, vector<16x64xbf16>
    %c0_1 = arith.constant 0 : index
    %c0_2 = arith.constant 0 : index
    %c0_3 = arith.constant 0 : index
    %1 = vector.load %arg1[%c0_1, %c0_2, %c0_3] : memref<5x64x64xbf16, #tpu.memory_space<vmem>>, vector<1x64x64xbf16>
    %2 = vector.shape_cast %1 : vector<1x64x64xbf16> to vector<64x64xbf16>
    %cst = arith.constant dense<0.000000e+00> : vector<16x64xf32>
    %3 = tpu.matmul %0, %2, %cst {dimension_numbers = #tpu.dot_dimension_numbers<[1], [0], [0], [1], [0, 0, 1, 1], [], []>} : vector<16x64xbf16>, vector<64x64xbf16>, vector<16x64xf32> -> vector<16x64xf32>
    %c0_4 = arith.constant 0 : index
    %c0_5 = arith.constant 0 : index
    %c0_6 = arith.constant 0 : index
    %4 = vector.load %arg2[%c0_4, %c0_5, %c0_6] : memref<5x1x64xf32, #tpu.memory_space<vmem>>, vector<1x1x64xf32>
    %5 = vector.shape_cast %4 : vector<1x1x64xf32> to vector<1x64xf32>
    %6 = vector.broadcast %5 : vector<1x64xf32> to vector<16x64xf32>
    %7 = arith.addf %3, %6 : vector<16x64xf32>
    %cst_7 = arith.constant 0.000000e+00 : f32
    %8 = vector.broadcast %cst_7 : f32 to vector<16x64xf32>
    %9 = arith.maximumf %7, %8 : vector<16x64xf32>
    %10 = arith.truncf %9 : vector<16x64xf32> to vector<16x64xbf16>
    %c1 = arith.constant 1 : index
    %c0_8 = arith.constant 0 : index
    %c0_9 = arith.constant 0 : index
    %11 = vector.load %arg1[%c1, %c0_8, %c0_9] : memref<5x64x64xbf16, #tpu.memory_space<vmem>>, vector<1x64x64xbf16>
    %12 = vector.shape_cast %11 : vector<1x64x64xbf16> to vector<64x64xbf16>
    %cst_10 = arith.constant dense<0.000000e+00> : vector<16x64xf32>
    %13 = tpu.matmul %10, %12, %cst_10 {dimension_numbers = #tpu.dot_dimension_numbers<[1], [0], [0], [1], [0, 0, 1, 1], [], []>} : vector<16x64xbf16>, vector<64x64xbf16>, vector<16x64xf32> -> vector<16x64xf32>
    %c1_11 = arith.constant 1 : index
    %c0_12 = arith.constant 0 : index
    %c0_13 = arith.constant 0 : index
    %14 = vector.load %arg2[%c1_11, %c0_12, %c0_13] : memref<5x1x64xf32, #tpu.memory_space<vmem>>, vector<1x1x64xf32>
    %15 = vector.shape_cast %14 : vector<1x1x64xf32> to vector<1x64xf32>
    %16 = vector.broadcast %15 : vector<1x64xf32> to vector<16x64xf32>
    %17 = arith.addf %13, %16 : vector<16x64xf32>
    %cst_14 = arith.constant 0.000000e+00 : f32
    %18 = vector.broadcast %cst_14 : f32 to vector<16x64xf32>
    %19 = arith.maximumf %17, %18 : vector<16x64xf32>
    %20 = arith.truncf %19 : vector<16x64xf32> to vector<16x64xbf16>
    %c2 = arith.constant 2 : index
    %c0_15 = arith.constant 0 : index
    %c0_16 = arith.constant 0 : index
    %21 = vector.load %arg1[%c2, %c0_15, %c0_16] : memref<5x64x64xbf16, #tpu.memory_space<vmem>>, vector<1x64x64xbf16>
    %22 = vector.shape_cast %21 : vector<1x64x64xbf16> to vector<64x64xbf16>
    %cst_17 = arith.constant dense<0.000000e+00> : vector<16x64xf32>
    %23 = tpu.matmul %20, %22, %cst_17 {dimension_numbers = #tpu.dot_dimension_numbers<[1], [0], [0], [1], [0, 0, 1, 1], [], []>} : vector<16x64xbf16>, vector<64x64xbf16>, vector<16x64xf32> -> vector<16x64xf32>
    %c2_18 = arith.constant 2 : index
    %c0_19 = arith.constant 0 : index
    %c0_20 = arith.constant 0 : index
    %24 = vector.load %arg2[%c2_18, %c0_19, %c0_20] : memref<5x1x64xf32, #tpu.memory_space<vmem>>, vector<1x1x64xf32>
    %25 = vector.shape_cast %24 : vector<1x1x64xf32> to vector<1x64xf32>
    %26 = vector.broadcast %25 : vector<1x64xf32> to vector<16x64xf32>
    %27 = arith.addf %23, %26 : vector<16x64xf32>
    %cst_21 = arith.constant 0.000000e+00 : f32
    %28 = vector.broadcast %cst_21 : f32 to vector<16x64xf32>
    %29 = arith.maximumf %27, %28 : vector<16x64xf32>
    %30 = arith.truncf %29 : vector<16x64xf32> to vector<16x64xbf16>
    %c3 = arith.constant 3 : index
    %c0_22 = arith.constant 0 : index
    %c0_23 = arith.constant 0 : index
    %31 = vector.load %arg1[%c3, %c0_22, %c0_23] : memref<5x64x64xbf16, #tpu.memory_space<vmem>>, vector<1x64x64xbf16>
    %32 = vector.shape_cast %31 : vector<1x64x64xbf16> to vector<64x64xbf16>
    %cst_24 = arith.constant dense<0.000000e+00> : vector<16x64xf32>
    %33 = tpu.matmul %30, %32, %cst_24 {dimension_numbers = #tpu.dot_dimension_numbers<[1], [0], [0], [1], [0, 0, 1, 1], [], []>} : vector<16x64xbf16>, vector<64x64xbf16>, vector<16x64xf32> -> vector<16x64xf32>
    %c3_25 = arith.constant 3 : index
    %c0_26 = arith.constant 0 : index
    %c0_27 = arith.constant 0 : index
    %34 = vector.load %arg2[%c3_25, %c0_26, %c0_27] : memref<5x1x64xf32, #tpu.memory_space<vmem>>, vector<1x1x64xf32>
    %35 = vector.shape_cast %34 : vector<1x1x64xf32> to vector<1x64xf32>
    %36 = vector.broadcast %35 : vector<1x64xf32> to vector<16x64xf32>
    %37 = arith.addf %33, %36 : vector<16x64xf32>
    %cst_28 = arith.constant 0.000000e+00 : f32
    %38 = vector.broadcast %cst_28 : f32 to vector<16x64xf32>
    %39 = arith.maximumf %37, %38 : vector<16x64xf32>
    %40 = arith.truncf %39 : vector<16x64xf32> to vector<16x64xbf16>
    %c4 = arith.constant 4 : index
    %c0_29 = arith.constant 0 : index
    %c0_30 = arith.constant 0 : index
    %41 = vector.load %arg1[%c4, %c0_29, %c0_30] : memref<5x64x64xbf16, #tpu.memory_space<vmem>>, vector<1x64x64xbf16>
    %42 = vector.shape_cast %41 : vector<1x64x64xbf16> to vector<64x64xbf16>
    %cst_31 = arith.constant dense<0.000000e+00> : vector<16x64xf32>
    %43 = tpu.matmul %40, %42, %cst_31 {dimension_numbers = #tpu.dot_dimension_numbers<[1], [0], [0], [1], [0, 0, 1, 1], [], []>} : vector<16x64xbf16>, vector<64x64xbf16>, vector<16x64xf32> -> vector<16x64xf32>
    %c4_32 = arith.constant 4 : index
    %c0_33 = arith.constant 0 : index
    %c0_34 = arith.constant 0 : index
    %44 = vector.load %arg2[%c4_32, %c0_33, %c0_34] : memref<5x1x64xf32, #tpu.memory_space<vmem>>, vector<1x1x64xf32>
    %45 = vector.shape_cast %44 : vector<1x1x64xf32> to vector<1x64xf32>
    %46 = vector.broadcast %45 : vector<1x64xf32> to vector<16x64xf32>
    %47 = arith.addf %43, %46 : vector<16x64xf32>
    %48 = arith.negf %47 : vector<16x64xf32>
    %49 = math.exp %48 : vector<16x64xf32>
    %cst_35 = arith.constant 1.000000e+00 : f32
    %50 = vector.broadcast %cst_35 : f32 to vector<16x64xf32>
    %51 = arith.addf %50, %49 : vector<16x64xf32>
    %52 = arith.divf %50, %51 : vector<16x64xf32>
    %53 = arith.truncf %52 : vector<16x64xf32> to vector<16x64xbf16>
    %c0_36 = arith.constant 0 : index
    %c0_37 = arith.constant 0 : index
    %54 = vector.load %arg4[%c0_36, %c0_37] : memref<16x64xbf16, #tpu.memory_space<vmem>>, vector<16x64xbf16>
    tpu.vector_store %arg4[%c0_36, %c0_37], %53 {strides = array<i32>} : memref<16x64xbf16, #tpu.memory_space<vmem>>, vector<16x64xbf16>,
    return
  }
  func.func @transform_0(%arg0: i32) -> (i32, i32, i32) {
    %c0_i32 = arith.constant 0 : i32
    %c0_i32_0 = arith.constant 0 : i32
    %c0_i32_1 = arith.constant 0 : i32
    %c0_i32_2 = arith.constant 0 : i32
    return %c0_i32, %c0_i32_0, %c0_i32_1 : i32, i32, i32
  }
  func.func @transform_1(%arg0: i32) -> (i32, i32, i32) {
    %c0_i32 = arith.constant 0 : i32
    %c0_i32_0 = arith.constant 0 : i32
    %c0_i32_1 = arith.constant 0 : i32
    %c0_i32_2 = arith.constant 0 : i32
    return %c0_i32, %c0_i32_0, %c0_i32_1 : i32, i32, i32
  }
  func.func @transform_2(%arg0: i32) -> (i32, i32) {
    %c0_i32 = arith.constant 0 : i32
    %c0_i32_0 = arith.constant 0 : i32
    return %arg0, %c0_i32 : i32, i32
  }
  func.func @transform_3(%arg0: i32) -> (i32, i32) {
    %c0_i32 = arith.constant 0 : i32
    %c0_i32_0 = arith.constant 0 : i32
    return %arg0, %c0_i32 : i32, i32
  }
}

</mosaic_0001>

<bundles_post_ra>
// kernel: tpu_custom_call.1
= control target key start
LH: loop header
LB: loop body
LE: loop exit
PB: predicated region body
PF: predicated region fallthrough
CT: control target
= control target key end

     0   :  { %8 = vsyncpa [#allocation3], 0  ;;  %s918_s0 = inlined_call_operand.hbm [shape: bf16[5,64,64], index: 0, kind: input, shape index: {}]   ;;  %s919_s1 = inlined_call_operand.hbm [shape: f32[5,1,64], index: 1, kind: input, shape index: {}]   ;;  %s920_s2 = inlined_call_operand.hbm [shape: bf16[16,64], index: 2, kind: input, shape index: {}]   ;;  %s921_s3 = inlined_call_operand.hbm [shape: bf16[16,64], index: 3, kind: output, shape index: {}]  }
   0x1   :  { %9 = vsyncpa [#allocation6], 0 }
   0x2   :  { %10 = vsyncpa [#allocation4], 0  ;;  %s796_s12 = smov [#allocation5]   ;;  %s702_s16 = scalar_lea.hbm %s919_s1, 80 }
   0x3   :  { %s28_s13 = sshll.u32 %s796_s12, 4  ;;  %p703_p0 = scmp.ne.s32.totalorder %s919_s1, %s702_s16  ;;  %s29_s13 = int_to_ptr.vmem [resolvable:$true] %s28_s13 }
   0x4   :  { %p706_p1 = scmp.lt.u32.totalorder %s702_s16, %s919_s1 }
   0x6   :  { %p708_p2 = pnand %p706_p1, %p703_p0 }
   0x8   :  { %711 = shalt.err (!%p708_p2)
}
   0x9   :  { %s712_s21 = scalar_lea.vmem %s29_s13, 80  ;;  %s716_s22 = scalar_lea.vmem %s29_s13, 96 }
   0xa   :  { %p713_p3 = scmp.ne.s32.totalorder %s29_s13, %s712_s21  ;;  %p717_p4 = scmp.lt.s32.totalorder %s29_s13, %s29_s13 }
   0xb   :  { %p718_p5 = scmp.lt.s32.totalorder %s716_s22, %s712_s21 }
   0xd   :  { %p719_p6 = por %p718_p5, %p717_p4 }
   0xf   :  { %p720_p7 = pnand %p719_p6, %p713_p3 }
  0x11   :  { %723 = shalt.err (!%p720_p7)
}
  0x12   :  { %s797_s23 = smov 16   ;;  %s798_s24 = smov 1  }
  0x13   :  { %34 = dma.hbm_to_vmem [thread:$0]  %s919_s1, 80, %s29_s13, [#allocation6], %s797_s23, %s797_s23, %s798_s24  }
  0x14   :  { %s799_s27 = smov [#allocation2]   ;;  %s724_s4 = scalar_lea.hbm %s918_s0, 2560 }
  0x15   :  { %s16_s28 = sshll.u32 %s799_s27, 4  ;;  %p725_p8 = scmp.ne.s32.totalorder %s918_s0, %s724_s4  ;;  %s17_s28 = int_to_ptr.vmem [resolvable:$true] %s16_s28 }
  0x16   :  { %p728_p9 = scmp.lt.u32.totalorder %s724_s4, %s918_s0 }
  0x18   :  { %p730_p10 = pnand %p728_p9, %p725_p8 }
  0x1a   :  { %733 = shalt.err (!%p730_p10)
}
  0x1b   :  { %s734_s9 = scalar_lea.vmem %s17_s28, 2560  ;;  %p739_p12 = scmp.lt.s32.totalorder %s17_s28, %s17_s28 }
  0x1c   :  { %p735_p11 = scmp.ne.s32.totalorder %s17_s28, %s734_s9  ;;  %p740_p13 = scmp.lt.s32.totalorder %s734_s9, %s734_s9 }
  0x1e   :  { %p741_p0 = por %p740_p13, %p739_p12 }
  0x20   :  { %p742_p1 = pnand %p741_p0, %p735_p11 }
  0x22   :  { %745 = shalt.err (!%p742_p1)
}
  0x23   :  { %s800_s1 = smov 64   ;;  %s801_s10 = smov 4  }
  0x24   :  { %22 = dma.hbm_to_vmem [thread:$0]  %s918_s0, 2560, %s17_s28, [#allocation3], %s800_s1, %s800_s1, %s801_s10  }
  0x25   :  { %s802_s13 = smov [#allocation7]   ;;  %s746_s17 = scalar_lea.hbm %s920_s2, 128 }
  0x26   :  { %s40_s14 = sshll.u32 %s802_s13, 4  ;;  %p747_p2 = scmp.ne.s32.totalorder %s920_s2, %s746_s17  ;;  %s41_s14 = int_to_ptr.vmem [resolvable:$true] %s40_s14 }
  0x27   :  { %p750_p3 = scmp.lt.u32.totalorder %s746_s17, %s920_s2 }
  0x29   :  { %p752_p4 = pnand %p750_p3, %p747_p2 }
  0x2b   :  { %755 = shalt.err (!%p752_p4)
}
  0x2c   :  { %s756_s22 = scalar_lea.vmem %s41_s14, 128  ;;  %p761_p6 = scmp.lt.s32.totalorder %s41_s14, %s41_s14 }
  0x2d   :  { %p757_p5 = scmp.ne.s32.totalorder %s41_s14, %s756_s22  ;;  %p762_p7 = scmp.lt.s32.totalorder %s756_s22, %s756_s22 }
  0x2f   :  { %p763_p8 = por %p762_p7, %p761_p6 }
  0x31   :  { %p764_p9 = pnand %p763_p8, %p757_p5 }
  0x33   :  { %767 = shalt.err (!%p764_p9)
}
  0x34   :  { %46 = dma.hbm_to_vmem [thread:$0]  %s920_s2, 128, %s41_s14, [#allocation6], %s800_s1, %s800_s1, %s801_s10  }
  0x35   :  { %790 = dma.done.wait [#allocation3], 2560  }
  0x36   :  { %791 = vsyncadd [#allocation3], 4294964736 }
  0x37   :  { %792 = dma.done.wait [#allocation6], 208  }
  0x38   :  { %793 = vsyncadd [#allocation6], 4294967088  ;;  %v803_v0 = vmov 0.0   ;;  %vm804_vm0 = vmmov 0   ;;  %v673_v1 = vld [vmem:[#allocation2] sm:$0xff]   ;;  %v674_v2 = vld [vmem:[#allocation2 + $0x8] sm:$0xff]  }
  0x39   :  { %603 = vmatprep.subr.bf16.mxu0 %v803_v0  ;;  %611 = vmatprep.mubr.msk.bf16.mxu0 %vm804_vm0, %v803_v0  ;;  %v678_v3 = vld [vmem:[#allocation2 + $0x20] sm:$0xff]   ;;  %v675_v4 = vld [vmem:[#allocation2 + $0x10] sm:$0xff]   ;;  %vm103_vm1 = vcmask 523264   ;;  %v679_v5 = vld [vmem:[#allocation2 + $0x28] sm:$0xff]   ;;  %vm520_vm2 = vcmask 519168   ;;  %s805_s2 = smov [#allocation8]  }
  0x3a   :  { %615 = vmatprep.subr.bf16.mxu1 %v803_v0  ;;  %623 = vmatprep.mubr.msk.bf16.mxu1 %vm804_vm0, %v803_v0  ;;  %v676_v6 = vld [vmem:[#allocation2 + $0x18] sm:$0xff]   ;;  %v677_v7 = vld [vmem:[#allocation7] sm:$0xff]   ;;  %v680_v8 = vld [vmem:[#allocation2 + $0x30] sm:$0xff]   ;;  %s528_s24 = sshll.u32 %s805_s2, 4  ;;  %s529_s24 = int_to_ptr.vmem [resolvable:$true] %s528_s24 }
  0x3b   :  { %604 = vmatpush3.bf16.msra.mxu0 %v673_v1  ;;  %616 = vmatpush3.bf16.msra.mxu1 %v678_v3  ;;  %v681_v9 = vld [vmem:[#allocation2 + $0x38] sm:$0xff]   ;;  %v682_v10 = vld [vmem:[#allocation2 + $0x40] sm:$0xff]   ;;  %v683_v11 = vld [vmem:[#allocation2 + $0x48] sm:$0xff]   ;;  %s768_s25 = scalar_lea.vmem %s529_s24, 128  ;;  %p773_p11 = scmp.lt.s32.totalorder %s529_s24, %s529_s24 }
  0x3c   :  { %605 = vmatprep.subr.bf16.mxu0 %v803_v0  ;;  %617 = vmatprep.subr.bf16.mxu1 %v803_v0  ;;  %v541_v12 = vld [vmem:[#allocation5] ss:$0 sm:$0xff]  ;;  %v684_v22 = vld [vmem:[#allocation2 + $0x50] sm:$0xff]   ;;  %v685_v23 = vld [vmem:[#allocation2 + $0x58] sm:$0xff]   ;;  %p769_p10 = scmp.ne.s32.totalorder %s529_s24, %s768_s25  ;;  %p774_p12 = scmp.lt.s32.totalorder %s768_s25, %s768_s25 }
  0x3d   :  { %v686_v24 = vld [vmem:[#allocation2 + $0x60] sm:$0xff]   ;;  %v687_v25 = vld [vmem:[#allocation2 + $0x68] sm:$0xff]   ;;  %v688_v36 = vld [vmem:[#allocation2 + $0x70] sm:$0xff]  }
  0x3e   :  { %v548_v26 = vld [vmem:[#allocation5 + $0x1] ss:$0 sm:$0xff]  ;;  %v689_v37 = vld [vmem:[#allocation2 + $0x78] sm:$0xff]   ;;  %v691_v39 = vld [vmem:[#allocation2 + $0x88] sm:$0xff]   ;;  %p775_p13 = por %p774_p12, %p773_p11 }
  0x3f   :  { %606 = vmatpush3.bf16.msra.mxu0 %v674_v2  ;;  %618 = vmatpush3.bf16.msra.mxu1 %v679_v5  ;;  %v690_v38 = vld [vmem:[#allocation2 + $0x80] sm:$0xff]   ;;  %v692_v50 = vld [vmem:[#allocation2 + $0x90] sm:$0xff]   ;;  %v693_v51 = vld [vmem:[#allocation2 + $0x98] sm:$0xff]  }
  0x40   :  { %607 = vmatprep.subr.bf16.mxu0 %v803_v0  ;;  %619 = vmatprep.subr.bf16.mxu1 %v803_v0  ;;  %v554_v40 = vld [vmem:[#allocation5 + $0x2] ss:$0 sm:$0xff]  ;;  %v560_v52 = vld [vmem:[#allocation5 + $0x3] ss:$0 sm:$0xff]  ;;  %v566_v62 = vld [vmem:[#allocation5 + $0x4] ss:$0 sm:$0xff]  ;;  %p776_p0 = pnand %p775_p13, %p769_p10 }
  0x43   :  { %608 = vmatpush3.bf16.msra.mxu0 %v675_v4  ;;  %620 = vmatpush3.bf16.msra.mxu1 %v680_v8 }
  0x44   :  { %609 = vmatprep.subr.bf16.mxu0 %v803_v0  ;;  %621 = vmatprep.subr.bf16.mxu1 %v803_v0 }
  0x47   :  { %610 = vmatpush3.bf16.msra.mxu0 %v676_v6  ;;  %622 = vmatpush3.bf16.msra.mxu1 %v681_v9 }
  0x48   :  { %627 = vmatprep.subr.bf16.mxu0 %v803_v0  ;;  %639 = vmatprep.subr.bf16.mxu1 %v803_v0 }
  0x4a   :  { %612 = vmatmul.mubr.msk.bf16.vlgmr.msra.gmra.mrb[0].mxu0 %vm103_vm1, %v677_v7 }
  0x4b   :  { %635 = vmatprep.mubr.msk.bf16.mxu0 %vm804_vm0, %v803_v0  ;;  %628 = vmatpush3.bf16.msra.mxu0 %v682_v10 }
  0x4c   :  { %629 = vmatprep.subr.bf16.mxu0 %v803_v0 }
  0x4f   :  { %630 = vmatpush3.bf16.msra.mxu0 %v683_v11 }
  0x50   :  { %631 = vmatprep.subr.bf16.mxu0 %v803_v0 }
  0x53   :  { %632 = vmatpush3.bf16.msra.mxu0 %v684_v22 }
  0x54   :  { %633 = vmatprep.subr.bf16.mxu0 %v803_v0 }
  0x57   :  { %634 = vmatpush3.bf16.msra.mxu0 %v685_v23 }
  0x58   :  { %651 = vmatprep.subr.bf16.mxu0 %v803_v0 }
 0x11d   :  { %v141_v13 = vpop.f32.mrb[0].mxu0 }
 0x11e   :  { %v142_v14 = vadd.f32 %v541_v12, %v141_v13  ;;  %v613_v15 = vpop.f32.mrb[1].mxu0 }
 0x11f   :  { %v144_v16 = vpop.f32.mrb[2].mxu0 }
 0x120   :  { %v145_v17 = vadd.f32 %v541_v12, %v144_v16  ;;  %v614_v18 = vpop.f32.mrb[3].mxu0  ;;  %v148_v19 = vmax.f32 %v142_v14, 0.0 }
 0x122   :  { %v149_v20 = vmax.f32 %v145_v17, 0.0 }
 0x124   :  { %v150_v21 = vpack.c.bf16 %v149_v20, %v148_v19 }
 0x126   :  { %624 = vmatmul.mubr.msk.bf16.vlgmr.msra.gmra.mrb[0].mxu1 %vm103_vm1, %v150_v21 }
 0x127   :  { %647 = vmatprep.mubr.msk.bf16.mxu1 %vm804_vm0, %v803_v0  ;;  %640 = vmatpush3.bf16.msra.mxu1 %v686_v24 }
 0x128   :  { %641 = vmatprep.subr.bf16.mxu1 %v803_v0 }
 0x12b   :  { %642 = vmatpush3.bf16.msra.mxu1 %v687_v25 }
 0x12c   :  { %643 = vmatprep.subr.bf16.mxu1 %v803_v0 }
 0x12f   :  { %644 = vmatpush3.bf16.msra.mxu1 %v688_v36 }
 0x130   :  { %645 = vmatprep.subr.bf16.mxu1 %v803_v0 }
 0x133   :  { %646 = vmatpush3.bf16.msra.mxu1 %v689_v37 }
 0x1f9   :  { %v229_v27 = vpop.f32.mrb[0].mxu1 }
 0x1fa   :  { %v230_v28 = vadd.f32 %v548_v26, %v229_v27  ;;  %v625_v29 = vpop.f32.mrb[1].mxu1 }
 0x1fb   :  { %v232_v30 = vpop.f32.mrb[2].mxu1 }
 0x1fc   :  { %v233_v31 = vadd.f32 %v548_v26, %v232_v30  ;;  %v626_v32 = vpop.f32.mrb[3].mxu1  ;;  %v236_v33 = vmax.f32 %v230_v28, 0.0 }
 0x1fe   :  { %v237_v34 = vmax.f32 %v233_v31, 0.0 }
 0x200   :  { %v238_v35 = vpack.c.bf16 %v237_v34, %v236_v33 }
 0x202   :  { %636 = vmatmul.mubr.msk.bf16.vlgmr.msra.gmra.mrb[4].mxu0 %vm103_vm1, %v238_v35 }
 0x203   :  { %659 = vmatprep.mubr.msk.bf16.mxu0 %vm804_vm0, %v803_v0  ;;  %652 = vmatpush3.bf16.msra.mxu0 %v690_v38 }
 0x204   :  { %653 = vmatprep.subr.bf16.mxu0 %v803_v0 }
 0x207   :  { %654 = vmatpush3.bf16.msra.mxu0 %v691_v39 }
 0x208   :  { %655 = vmatprep.subr.bf16.mxu0 %v803_v0 }
 0x20b   :  { %656 = vmatpush3.bf16.msra.mxu0 %v692_v50 }
 0x20c   :  { %657 = vmatprep.subr.bf16.mxu0 %v803_v0 }
 0x20f   :  { %658 = vmatpush3.bf16.msra.mxu0 %v693_v51 }
 0x2d5   :  { %v317_v41 = vpop.f32.mrb[4].mxu0 }
 0x2d6   :  { %v318_v42 = vadd.f32 %v554_v40, %v317_v41  ;;  %v637_v43 = vpop.f32.mrb[5].mxu0 }
 0x2d7   :  { %v320_v44 = vpop.f32.mrb[6].mxu0 }
 0x2d8   :  { %v321_v45 = vadd.f32 %v554_v40, %v320_v44  ;;  %v638_v46 = vpop.f32.mrb[7].mxu0  ;;  %v324_v47 = vmax.f32 %v318_v42, 0.0 }
 0x2da   :  { %v325_v48 = vmax.f32 %v321_v45, 0.0 }
 0x2dc   :  { %v326_v49 = vpack.c.bf16 %v325_v48, %v324_v47 }
 0x2de   :  { %648 = vmatmul.mubr.msk.bf16.vlgmr.msra.gmra.mrb[4].mxu1 %vm103_vm1, %v326_v49 }
 0x3b1   :  { %v405_v53 = vpop.f32.mrb[4].mxu1 }
 0x3b2   :  { %v406_v54 = vadd.f32 %v560_v52, %v405_v53  ;;  %v649_v55 = vpop.f32.mrb[5].mxu1 }
 0x3b3   :  { %v408_v56 = vpop.f32.mrb[6].mxu1 }
 0x3b4   :  { %v409_v57 = vadd.f32 %v560_v52, %v408_v56  ;;  %v650_v58 = vpop.f32.mrb[7].mxu1  ;;  %v412_v59 = vmax.f32 %v406_v54, 0.0 }
 0x3b6   :  { %v413_v60 = vmax.f32 %v409_v57, 0.0 }
 0x3b8   :  { %v414_v61 = vpack.c.bf16 %v413_v60, %v412_v59 }
 0x3ba   :  { %660 = vmatmul.mubr.msk.bf16.vlgmr.msra.gmra.mrb[8].mxu0 %vm103_vm1, %v414_v61 }
 0x48d   :  { %v493_v63 = vpop.f32.mrb[8].mxu0 }
 0x48e   :  { %v494_v1 = vadd.f32 %v566_v62, %v493_v63  ;;  %v661_v2 = vpop.f32.mrb[9].mxu0 }
 0x48f   :  { %v496_v3 = vpop.f32.mrb[10].mxu0 }
 0x490   :  { %v572_v0 = vmul.f32 -1.442695, %v494_v1  ;;  %v497_v4 = vadd.f32 %v566_v62, %v496_v3  ;;  %v662_v5 = vpop.f32.mrb[11].mxu0 }
 0x492   :  { %694 = vpow2.f32 %v572_v0  ;;  %v573_v6 = vmul.f32 -1.442695, %v497_v4 }
 0x494   :  { %696 = vpow2.f32 %v573_v6 }
 0x49c   :  { %v695_v7 = vpop.eup %694 }
 0x49d   :  { %v506_v8 = vadd.f32 1.0, %v695_v7 }
 0x49e   :  { %v697_v9 = vpop.eup %696 }
 0x49f   :  { %698 = vrcp.f32 %v506_v8  ;;  %v507_v10 = vadd.f32 1.0, %v697_v9 }
 0x4a1   :  { %700 = vrcp.f32 %v507_v10 }
 0x4a9   :  { %v699_v11 = vpop.eup %698 }
 0x4aa   :  { %v576_v12 = vpack.c.bf16 %v699_v11, %v699_v11 }
 0x4ab   :  { %v701_v13 = vpop.eup %700 }
 0x4ac   :  { %v577_v14 = vpack.c.bf16 %v701_v13, %v701_v13  ;;  %521 = vst.msk [vmem:[#allocation8] sm:$0xf] %vm520_vm2, %v576_v12 }
 0x4ae   :  { %522 = vst.msk [vmem:[#allocation8 + $0x4] sm:$0xf] %vm520_vm2, %v577_v14 }
 0x4af   :  { %779 = shalt.err (!%p776_p0)
}
 0x4b0   :  { %s780_s28 = scalar_lea.hbm %s921_s3, 128 }
 0x4b1   :  { %p781_p1 = scmp.ne.s32.totalorder %s921_s3, %s780_s28  ;;  %p784_p2 = scmp.lt.u32.totalorder %s780_s28, %s921_s3 }
 0x4b3   :  { %p786_p3 = pnand %p784_p2, %p781_p1 }
 0x4b5   :  { %789 = shalt.err (!%p786_p3)
}
 0x4b6   :  { %534 = dma.vmem_to_hbm [thread:$0]  %s529_s24, 128, %s921_s3, [#allocation4], %s800_s1, %s800_s1, %s801_s10  }
 0x4b7   :  { %794 = dma.done.wait [#allocation4], 128  }
 0x4b8   :  { %795 = vsyncadd [#allocation4], 4294967168 }
 0x4b9   :  { %538 = vsyncpa [#allocation3], 1 }
 0x4ba   :  { %539 = vsyncpa [#allocation6], 1 }
 0x4bb   :  { %540 = vsyncpa [#allocation4], 1 }

</bundles_post_ra>
